<compile_context>
chip_gen: v7x
topology: tpu7x:2x2x1
jax: 0.10.0
libtpu: 0.0.40
codegen_flags: <defaults>
</compile_context>

<pallas_src>
import jax
import jax.numpy as jnp
from jax import lax
from jax.experimental import pallas as pl
from jax.experimental.pallas import tpu as pltpu


def _gcndecor_kernel(news_ref, nodes_ref, A_ref, adj_ref,
                     wc1_ref, bc1_ref, wc2_ref, bc2_ref,
                     w1_ref, w0_ref, w2_ref,
                     out_ref, mid_ref,
                     h_ref, xloc_ref):
    f32 = jnp.float32

    # NaN imputation: torch.where(isnan(nodes), 0, nodes)
    X = nodes_ref[...]
    X = jnp.where(jnp.isnan(X), jnp.zeros_like(X), X)

    # GCN symmetric normalization with self loops, folded into a degree vector.
    A = A_ref[...]
    dinv = lax.rsqrt(jnp.sum(A, axis=1, keepdims=True) + 1.0)   # [N, 1], deg >= 1

    def gcn_prop(Z):
        # Â @ Z without materializing Â:  dinv ⊙ ((A @ (dinv ⊙ Z)) + dinv ⊙ Z)
        Zs = dinv * Z
        return dinv * (jnp.dot(A, Zs, preferred_element_type=f32) + Zs)

    # conv1 / conv2 (GCNConv: x @ W -> propagate -> + bias) + ReLU
    H = jnp.dot(X, wc1_ref[...], preferred_element_type=f32)
    H = jnp.maximum(gcn_prop(H) + bc1_ref[...], 0.0)
    H = jnp.dot(H, wc2_ref[...], preferred_element_type=f32)
    H = jnp.maximum(gcn_prop(H) + bc2_ref[...], 0.0)
    h_ref[...] = H

    # x_loc = relu(conv2(...))[news_list] — scalar-indexed row gather from VMEM
    n_news_pad = xloc_ref.shape[0]
    for i in range(n_news_pad):                  # small, static trip count
        idx = news_ref[i]                        # int32 scalar from SMEM
        xloc_ref[pl.ds(i, 1), :] = h_ref[pl.ds(idx, 1), :]
    x_loc = xloc_ref[...]

    # row_normalize(adj) folded into a reciprocal row scale (zero rows -> /1)
    adj = adj_ref[...]
    rs = jnp.sum(adj, axis=1, keepdims=True)
    inv_rs = 1.0 / jnp.where(rs == 0.0, 1.0, rs)

    # GCN head
    support = jnp.dot(x_loc, w1_ref[...], preferred_element_type=f32)   # weight1
    out1 = inv_rs * jnp.dot(adj, support, preferred_element_type=f32)   # adjn @ support
    hid1 = jnp.dot(out1, w0_ref[...], preferred_element_type=f32)       # weight0
    mid_ref[...] = hid1                                                 # middle_representations
    hid2 = inv_rs * jnp.dot(adj, hid1, preferred_element_type=f32)      # adjn @ hid1
    out_ref[...] = jnp.maximum(
        jnp.dot(hid2, w2_ref[...], preferred_element_type=f32), 0.0)    # relu(weight2(...))


def _round_up(x, m):
    return (x + m - 1) // m * m


def _pad2(x, rows, cols):
    r, c = x.shape
    return jnp.pad(x.astype(jnp.float32), ((0, rows - r), (0, cols - c)))


def gcndecor_forward(nodes, A, adj, news_list, params):
    """Returns (output [n_news, n_classes], middle [n_news, hid_dim])."""
    wc1, bc1, wc2, bc2, w1, w0, w2 = params
    N, _ = nodes.shape
    n_news = adj.shape[0]
    hid_dim = w0.shape[0]
    n_classes = w2.shape[1]

    P = 128                          # lane-dense padded feature width
    Np = _round_up(max(N, 8), 8)     # sublane-dense node-row count
    Mp = _round_up(max(n_news, 8), 8)

    nodes_p = _pad2(nodes, Np, P)
    A_p = _pad2(A, Np, Np)
    adj_p = _pad2(adj, Mp, Mp)
    news_p = jnp.pad(news_list.astype(jnp.int32), (0, Mp - n_news))
    wc1_p, bc1_p = _pad2(wc1, P, P), _pad2(bc1, 1, P)
    wc2_p, bc2_p = _pad2(wc2, P, P), _pad2(bc2, 1, P)
    w1_p, w0_p, w2_p = _pad2(w1, P, P), _pad2(w0, P, P), _pad2(w2, P, P)

    vmem = pl.BlockSpec(memory_space=pltpu.MemorySpace.VMEM)
    smem = pl.BlockSpec(memory_space=pltpu.MemorySpace.SMEM)

    out_p, mid_p = pl.pallas_call(
        _gcndecor_kernel,
        out_shape=(jax.ShapeDtypeStruct((Mp, P), jnp.float32),
                   jax.ShapeDtypeStruct((Mp, P), jnp.float32)),
        in_specs=[smem] + [vmem] * 10,
        out_specs=(vmem, vmem),
        scratch_shapes=[pltpu.VMEM((Np, P), jnp.float32),       # H (conv2 output)
                        pltpu.VMEM((Mp, P), jnp.float32)],      # gathered x_loc
        compiler_params=pltpu.CompilerParams(vmem_limit_bytes=32 * 1024 * 1024),
    )(news_p, nodes_p, A_p, adj_p, wc1_p, bc1_p, wc2_p, bc2_p, w1_p, w0_p, w2_p)

    # slice the valid rows/lanes back out (padding is exactly zero / discarded)
    return out_p[:n_news, :n_classes], mid_p[:n_news, :hid_dim]


def _reference(nodes, A, adj, news_list, params):
    wc1, bc1, wc2, bc2, w1, w0, w2 = params
    X = jnp.where(jnp.isnan(nodes), 0.0, nodes)
    dinv = 1.0 / jnp.sqrt(A.sum(1, keepdims=True) + 1.0)

    def prop(Z):
        Zs = dinv * Z
        return dinv * (A @ Zs + Zs)

    H = jnp.maximum(prop(X @ wc1) + bc1, 0.0)
    H = jnp.maximum(prop(H @ wc2) + bc2, 0.0)
    x_loc = H[news_list]
    rs = adj.sum(1, keepdims=True)
    adjn = adj / jnp.where(rs == 0, 1.0, rs)
    out1 = adjn @ (x_loc @ w1)
    hid1 = out1 @ w0
    out = jnp.maximum((adjn @ hid1) @ w2, 0.0)
    return out, hid1


if __name__ == "__main__":
    key = jax.random.PRNGKey(0)
    N, in_dim, n_news, hid_dim, n_classes = 16, 8, 8, 16, 4
    ks = jax.random.split(key, 10)

    # node features with a couple of NaNs (the module imputes them to zero)
    nodes = jax.random.normal(ks[0], (N, in_dim), jnp.float32)
    nodes = nodes.at[1, 3].set(jnp.nan).at[5, 0].set(jnp.nan)

    # symmetric node-level adjacency A (self loops folded into the degree in-kernel)
    A = (jax.random.uniform(ks[1], (N, N)) < 0.3).astype(jnp.float32)
    A = jnp.maximum(A, A.T) * (1.0 - jnp.eye(N, dtype=jnp.float32))

    # news-level adjacency (row-normalized inside the kernel)
    adj = (jax.random.uniform(ks[2], (n_news, n_news)) < 0.4).astype(jnp.float32)

    # news_list indices (gathered inside the kernel via SMEM scalars)
    news_list = jnp.arange(0, 2 * n_news, 2, dtype=jnp.int32)

    # deterministic parameter init (Linear-style uniform(-1/sqrt(fan_in), ...))
    def u(k, shape, fan_in):
        b = 1.0 / jnp.sqrt(jnp.float32(fan_in))
        return jax.random.uniform(k, shape, jnp.float32, -b, b)

    wc1 = u(ks[3], (in_dim, in_dim), in_dim)
    bc1 = u(ks[4], (1, in_dim), in_dim)
    wc2 = u(ks[5], (in_dim, in_dim), in_dim)
    bc2 = u(ks[6], (1, in_dim), in_dim)
    w1 = u(ks[7], (in_dim, hid_dim), in_dim)      # weight1: in_dim -> hid_dim (no bias)
    w0 = u(ks[8], (hid_dim, hid_dim), hid_dim)    # weight0: hid_dim -> hid_dim (no bias)
    w2 = u(ks[9], (hid_dim, n_classes), hid_dim)  # weight2: hid_dim -> n_classes (no bias)
    params = (wc1, bc1, wc2, bc2, w1, w0, w2)

    out, mid = gcndecor_forward(nodes, A, adj, news_list, params)
    jax.block_until_ready((out, mid))

    ref_out, ref_mid = _reference(nodes, A, adj, news_list, params)
    assert out.shape == (n_news, n_classes) and mid.shape == (n_news, hid_dim)
    assert jnp.allclose(out, ref_out, atol=1e-4, rtol=1e-4)
    assert jnp.allclose(mid, ref_mid, atol=1e-4, rtol=1e-4)

    print("KERNEL_OK")
</pallas_src>

<mosaic_0001>
module attributes {stable_mosaic.version = 11 : i64} {
  func.func @_gcndecor_kernel(%arg0: memref<8xi32, #tpu.memory_space<smem>>, %arg1: memref<16x128xf32, #tpu.memory_space<vmem>>, %arg2: memref<16x16xf32, #tpu.memory_space<vmem>>, %arg3: memref<8x8xf32, #tpu.memory_space<vmem>>, %arg4: memref<128x128xf32, #tpu.memory_space<vmem>>, %arg5: memref<1x128xf32, #tpu.memory_space<vmem>>, %arg6: memref<128x128xf32, #tpu.memory_space<vmem>>, %arg7: memref<1x128xf32, #tpu.memory_space<vmem>>, %arg8: memref<128x128xf32, #tpu.memory_space<vmem>>, %arg9: memref<128x128xf32, #tpu.memory_space<vmem>>, %arg10: memref<128x128xf32, #tpu.memory_space<vmem>>, %arg11: memref<8x128xf32, #tpu.memory_space<vmem>>, %arg12: memref<8x128xf32, #tpu.memory_space<vmem>>, %arg13: memref<16x128xf32, #tpu.memory_space<vmem>>, %arg14: memref<8x128xf32, #tpu.memory_space<vmem>>) attributes {dimension_semantics = [], scalar_prefetch = 0 : i64, scratch_operands = 2 : i64, tpu.core_type = #tpu.core_type<tc>} {
    %c0 = arith.constant 0 : index
    %c0_0 = arith.constant 0 : index
    %0 = vector.load %arg1[%c0, %c0_0] : memref<16x128xf32, #tpu.memory_space<vmem>>, vector<16x128xf32>
    %1 = arith.cmpf one, %0, %0 : vector<16x128xf32>
    %cst = arith.constant 0.000000e+00 : f32
    %2 = vector.broadcast %cst : f32 to vector<16x128xf32>
    %3 = arith.select %1, %2, %0 : vector<16x128xi1>, vector<16x128xf32>
    %c0_1 = arith.constant 0 : index
    %c0_2 = arith.constant 0 : index
    %4 = vector.load %arg2[%c0_1, %c0_2] : memref<16x16xf32, #tpu.memory_space<vmem>>, vector<16x16xf32>
    %cst_3 = arith.constant dense<0.000000e+00> : vector<16xf32>
    %5 = vector.multi_reduction <add>, %4, %cst_3 [1] : vector<16x16xf32> to vector<16xf32>
    %6 = vector.shape_cast %5 : vector<16xf32> to vector<16x1xf32>
    %cst_4 = arith.constant 1.000000e+00 : f32
    %7 = vector.broadcast %cst_4 : f32 to vector<16x1xf32>
    %8 = arith.addf %6, %7 : vector<16x1xf32>
    %9 = math.rsqrt %8 : vector<16x1xf32>
    %c0_5 = arith.constant 0 : index
    %c0_6 = arith.constant 0 : index
    %10 = vector.load %arg4[%c0_5, %c0_6] : memref<128x128xf32, #tpu.memory_space<vmem>>, vector<128x128xf32>
    %cst_7 = arith.constant dense<0.000000e+00> : vector<16x128xf32>
    %11 = tpu.matmul %3, %10, %cst_7 {dimension_numbers = #tpu.dot_dimension_numbers<[1], [0], [0], [1], [0, 0, 1, 1], [], []>} : vector<16x128xf32>, vector<128x128xf32>, vector<16x128xf32> -> vector<16x128xf32>
    %12 = vector.broadcast %9 : vector<16x1xf32> to vector<16x128xf32>
    %13 = arith.mulf %12, %11 : vector<16x128xf32>
    %cst_8 = arith.constant dense<0.000000e+00> : vector<16x128xf32>
    %14 = tpu.matmul %4, %13, %cst_8 {dimension_numbers = #tpu.dot_dimension_numbers<[1], [0], [0], [1], [0, 0, 1, 1], [], []>} : vector<16x16xf32>, vector<16x128xf32>, vector<16x128xf32> -> vector<16x128xf32>
    %15 = arith.addf %14, %13 : vector<16x128xf32>
    %16 = vector.broadcast %9 : vector<16x1xf32> to vector<16x128xf32>
    %17 = arith.mulf %16, %15 : vector<16x128xf32>
    %c0_9 = arith.constant 0 : index
    %c0_10 = arith.constant 0 : index
    %18 = vector.load %arg5[%c0_9, %c0_10] : memref<1x128xf32, #tpu.memory_space<vmem>>, vector<1x128xf32>
    %19 = vector.broadcast %18 : vector<1x128xf32> to vector<16x128xf32>
    %20 = arith.addf %17, %19 : vector<16x128xf32>
    %cst_11 = arith.constant 0.000000e+00 : f32
    %21 = vector.broadcast %cst_11 : f32 to vector<16x128xf32>
    %22 = arith.maximumf %20, %21 : vector<16x128xf32>
    %c0_12 = arith.constant 0 : index
    %c0_13 = arith.constant 0 : index
    %23 = vector.load %arg6[%c0_12, %c0_13] : memref<128x128xf32, #tpu.memory_space<vmem>>, vector<128x128xf32>
    %cst_14 = arith.constant dense<0.000000e+00> : vector<16x128xf32>
    %24 = tpu.matmul %22, %23, %cst_14 {dimension_numbers = #tpu.dot_dimension_numbers<[1], [0], [0], [1], [0, 0, 1, 1], [], []>} : vector<16x128xf32>, vector<128x128xf32>, vector<16x128xf32> -> vector<16x128xf32>
    %25 = vector.broadcast %9 : vector<16x1xf32> to vector<16x128xf32>
    %26 = arith.mulf %25, %24 : vector<16x128xf32>
    %cst_15 = arith.constant dense<0.000000e+00> : vector<16x128xf32>
    %27 = tpu.matmul %4, %26, %cst_15 {dimension_numbers = #tpu.dot_dimension_numbers<[1], [0], [0], [1], [0, 0, 1, 1], [], []>} : vector<16x16xf32>, vector<16x128xf32>, vector<16x128xf32> -> vector<16x128xf32>
    %28 = arith.addf %27, %26 : vector<16x128xf32>
    %29 = vector.broadcast %9 : vector<16x1xf32> to vector<16x128xf32>
    %30 = arith.mulf %29, %28 : vector<16x128xf32>
    %c0_16 = arith.constant 0 : index
    %c0_17 = arith.constant 0 : index
    %31 = vector.load %arg7[%c0_16, %c0_17] : memref<1x128xf32, #tpu.memory_space<vmem>>, vector<1x128xf32>
    %32 = vector.broadcast %31 : vector<1x128xf32> to vector<16x128xf32>
    %33 = arith.addf %30, %32 : vector<16x128xf32>
    %cst_18 = arith.constant 0.000000e+00 : f32
    %34 = vector.broadcast %cst_18 : f32 to vector<16x128xf32>
    %35 = arith.maximumf %33, %34 : vector<16x128xf32>
    %c0_19 = arith.constant 0 : index
    %c0_20 = arith.constant 0 : index
    %36 = vector.load %arg13[%c0_19, %c0_20] : memref<16x128xf32, #tpu.memory_space<vmem>>, vector<16x128xf32>
    tpu.vector_store %arg13[%c0_19, %c0_20], %35 {strides = array<i32>} : memref<16x128xf32, #tpu.memory_space<vmem>>, vector<16x128xf32>,
    %c0_21 = arith.constant 0 : index
    %37 = memref.load %arg0[%c0_21] : memref<8xi32, #tpu.memory_space<smem>>
    %38 = arith.index_cast %37 : i32 to index
    %c0_22 = arith.constant 0 : index
    %39 = vector.load %arg13[%38, %c0_22] : memref<16x128xf32, #tpu.memory_space<vmem>>, vector<1x128xf32>
    %c0_23 = arith.constant 0 : index
    %c0_24 = arith.constant 0 : index
    %40 = vector.load %arg14[%c0_23, %c0_24] : memref<8x128xf32, #tpu.memory_space<vmem>>, vector<1x128xf32>
    tpu.vector_store %arg14[%c0_23, %c0_24], %39 {strides = array<i32>} : memref<8x128xf32, #tpu.memory_space<vmem>>, vector<1x128xf32>,
    %c1 = arith.constant 1 : index
    %41 = memref.load %arg0[%c1] : memref<8xi32, #tpu.memory_space<smem>>
    %42 = arith.index_cast %41 : i32 to index
    %c0_25 = arith.constant 0 : index
    %43 = vector.load %arg13[%42, %c0_25] : memref<16x128xf32, #tpu.memory_space<vmem>>, vector<1x128xf32>
    %c1_26 = arith.constant 1 : index
    %c0_27 = arith.constant 0 : index
    %44 = vector.load %arg14[%c1_26, %c0_27] : memref<8x128xf32, #tpu.memory_space<vmem>>, vector<1x128xf32>
    tpu.vector_store %arg14[%c1_26, %c0_27], %43 {strides = array<i32>} : memref<8x128xf32, #tpu.memory_space<vmem>>, vector<1x128xf32>,
    %c2 = arith.constant 2 : index
    %45 = memref.load %arg0[%c2] : memref<8xi32, #tpu.memory_space<smem>>
    %46 = arith.index_cast %45 : i32 to index
    %c0_28 = arith.constant 0 : index
    %47 = vector.load %arg13[%46, %c0_28] : memref<16x128xf32, #tpu.memory_space<vmem>>, vector<1x128xf32>
    %c2_29 = arith.constant 2 : index
    %c0_30 = arith.constant 0 : index
    %48 = vector.load %arg14[%c2_29, %c0_30] : memref<8x128xf32, #tpu.memory_space<vmem>>, vector<1x128xf32>
    tpu.vector_store %arg14[%c2_29, %c0_30], %47 {strides = array<i32>} : memref<8x128xf32, #tpu.memory_space<vmem>>, vector<1x128xf32>,
    %c3 = arith.constant 3 : index
    %49 = memref.load %arg0[%c3] : memref<8xi32, #tpu.memory_space<smem>>
    %50 = arith.index_cast %49 : i32 to index
    %c0_31 = arith.constant 0 : index
    %51 = vector.load %arg13[%50, %c0_31] : memref<16x128xf32, #tpu.memory_space<vmem>>, vector<1x128xf32>
    %c3_32 = arith.constant 3 : index
    %c0_33 = arith.constant 0 : index
    %52 = vector.load %arg14[%c3_32, %c0_33] : memref<8x128xf32, #tpu.memory_space<vmem>>, vector<1x128xf32>
    tpu.vector_store %arg14[%c3_32, %c0_33], %51 {strides = array<i32>} : memref<8x128xf32, #tpu.memory_space<vmem>>, vector<1x128xf32>,
    %c4 = arith.constant 4 : index
    %53 = memref.load %arg0[%c4] : memref<8xi32, #tpu.memory_space<smem>>
    %54 = arith.index_cast %53 : i32 to index
    %c0_34 = arith.constant 0 : index
    %55 = vector.load %arg13[%54, %c0_34] : memref<16x128xf32, #tpu.memory_space<vmem>>, vector<1x128xf32>
    %c4_35 = arith.constant 4 : index
    %c0_36 = arith.constant 0 : index
    %56 = vector.load %arg14[%c4_35, %c0_36] : memref<8x128xf32, #tpu.memory_space<vmem>>, vector<1x128xf32>
    tpu.vector_store %arg14[%c4_35, %c0_36], %55 {strides = array<i32>} : memref<8x128xf32, #tpu.memory_space<vmem>>, vector<1x128xf32>,
    %c5 = arith.constant 5 : index
    %57 = memref.load %arg0[%c5] : memref<8xi32, #tpu.memory_space<smem>>
    %58 = arith.index_cast %57 : i32 to index
    %c0_37 = arith.constant 0 : index
    %59 = vector.load %arg13[%58, %c0_37] : memref<16x128xf32, #tpu.memory_space<vmem>>, vector<1x128xf32>
    %c5_38 = arith.constant 5 : index
    %c0_39 = arith.constant 0 : index
    %60 = vector.load %arg14[%c5_38, %c0_39] : memref<8x128xf32, #tpu.memory_space<vmem>>, vector<1x128xf32>
    tpu.vector_store %arg14[%c5_38, %c0_39], %59 {strides = array<i32>} : memref<8x128xf32, #tpu.memory_space<vmem>>, vector<1x128xf32>,
    %c6 = arith.constant 6 : index
    %61 = memref.load %arg0[%c6] : memref<8xi32, #tpu.memory_space<smem>>
    %62 = arith.index_cast %61 : i32 to index
    %c0_40 = arith.constant 0 : index
    %63 = vector.load %arg13[%62, %c0_40] : memref<16x128xf32, #tpu.memory_space<vmem>>, vector<1x128xf32>
    %c6_41 = arith.constant 6 : index
    %c0_42 = arith.constant 0 : index
    %64 = vector.load %arg14[%c6_41, %c0_42] : memref<8x128xf32, #tpu.memory_space<vmem>>, vector<1x128xf32>
    tpu.vector_store %arg14[%c6_41, %c0_42], %63 {strides = array<i32>} : memref<8x128xf32, #tpu.memory_space<vmem>>, vector<1x128xf32>,
    %c7 = arith.constant 7 : index
    %65 = memref.load %arg0[%c7] : memref<8xi32, #tpu.memory_space<smem>>
    %66 = arith.index_cast %65 : i32 to index
    %c0_43 = arith.constant 0 : index
    %67 = vector.load %arg13[%66, %c0_43] : memref<16x128xf32, #tpu.memory_space<vmem>>, vector<1x128xf32>
    %c7_44 = arith.constant 7 : index
    %c0_45 = arith.constant 0 : index
    %68 = vector.load %arg14[%c7_44, %c0_45] : memref<8x128xf32, #tpu.memory_space<vmem>>, vector<1x128xf32>
    tpu.vector_store %arg14[%c7_44, %c0_45], %67 {strides = array<i32>} : memref<8x128xf32, #tpu.memory_space<vmem>>, vector<1x128xf32>,
    %c0_46 = arith.constant 0 : index
    %c0_47 = arith.constant 0 : index
    %69 = vector.load %arg14[%c0_46, %c0_47] : memref<8x128xf32, #tpu.memory_space<vmem>>, vector<8x128xf32>
    %c0_48 = arith.constant 0 : index
    %c0_49 = arith.constant 0 : index
    %70 = vector.load %arg3[%c0_48, %c0_49] : memref<8x8xf32, #tpu.memory_space<vmem>>, vector<8x8xf32>
    %cst_50 = arith.constant dense<0.000000e+00> : vector<8xf32>
    %71 = vector.multi_reduction <add>, %70, %cst_50 [1] : vector<8x8xf32> to vector<8xf32>
    %72 = vector.shape_cast %71 : vector<8xf32> to vector<8x1xf32>
    %cst_51 = arith.constant 0.000000e+00 : f32
    %73 = vector.broadcast %cst_51 : f32 to vector<8x1xf32>
    %74 = arith.cmpf oeq, %72, %73 : vector<8x1xf32>
    %cst_52 = arith.constant 1.000000e+00 : f32
    %75 = vector.broadcast %cst_52 : f32 to vector<8x1xf32>
    %76 = arith.select %74, %75, %72 : vector<8x1xi1>, vector<8x1xf32>
    %cst_53 = arith.constant 1.000000e+00 : f32
    %77 = vector.broadcast %cst_53 : f32 to vector<8x1xf32>
    %78 = arith.divf %77, %76 : vector<8x1xf32>
    %c0_54 = arith.constant 0 : index
    %c0_55 = arith.constant 0 : index
    %79 = vector.load %arg8[%c0_54, %c0_55] : memref<128x128xf32, #tpu.memory_space<vmem>>, vector<128x128xf32>
    %cst_56 = arith.constant dense<0.000000e+00> : vector<8x128xf32>
    %80 = tpu.matmul %69, %79, %cst_56 {dimension_numbers = #tpu.dot_dimension_numbers<[1], [0], [0], [1], [0, 0, 1, 1], [], []>} : vector<8x128xf32>, vector<128x128xf32>, vector<8x128xf32> -> vector<8x128xf32>
    %cst_57 = arith.constant dense<0.000000e+00> : vector<8x128xf32>
    %81 = tpu.matmul %70, %80, %cst_57 {dimension_numbers = #tpu.dot_dimension_numbers<[1], [0], [0], [1], [0, 0, 1, 1], [], []>} : vector<8x8xf32>, vector<8x128xf32>, vector<8x128xf32> -> vector<8x128xf32>
    %82 = vector.broadcast %78 : vector<8x1xf32> to vector<8x128xf32>
    %83 = arith.mulf %82, %81 : vector<8x128xf32>
    %c0_58 = arith.constant 0 : index
    %c0_59 = arith.constant 0 : index
    %84 = vector.load %arg9[%c0_58, %c0_59] : memref<128x128xf32, #tpu.memory_space<vmem>>, vector<128x128xf32>
    %cst_60 = arith.constant dense<0.000000e+00> : vector<8x128xf32>
    %85 = tpu.matmul %83, %84, %cst_60 {dimension_numbers = #tpu.dot_dimension_numbers<[1], [0], [0], [1], [0, 0, 1, 1], [], []>} : vector<8x128xf32>, vector<128x128xf32>, vector<8x128xf32> -> vector<8x128xf32>
    %c0_61 = arith.constant 0 : index
    %c0_62 = arith.constant 0 : index
    %86 = vector.load %arg12[%c0_61, %c0_62] : memref<8x128xf32, #tpu.memory_space<vmem>>, vector<8x128xf32>
    tpu.vector_store %arg12[%c0_61, %c0_62], %85 {strides = array<i32>} : memref<8x128xf32, #tpu.memory_space<vmem>>, vector<8x128xf32>,
    %cst_63 = arith.constant dense<0.000000e+00> : vector<8x128xf32>
    %87 = tpu.matmul %70, %85, %cst_63 {dimension_numbers = #tpu.dot_dimension_numbers<[1], [0], [0], [1], [0, 0, 1, 1], [], []>} : vector<8x8xf32>, vector<8x128xf32>, vector<8x128xf32> -> vector<8x128xf32>
    %88 = vector.broadcast %78 : vector<8x1xf32> to vector<8x128xf32>
    %89 = arith.mulf %88, %87 : vector<8x128xf32>
    %c0_64 = arith.constant 0 : index
    %c0_65 = arith.constant 0 : index
    %90 = vector.load %arg10[%c0_64, %c0_65] : memref<128x128xf32, #tpu.memory_space<vmem>>, vector<128x128xf32>
    %cst_66 = arith.constant dense<0.000000e+00> : vector<8x128xf32>
    %91 = tpu.matmul %89, %90, %cst_66 {dimension_numbers = #tpu.dot_dimension_numbers<[1], [0], [0], [1], [0, 0, 1, 1], [], []>} : vector<8x128xf32>, vector<128x128xf32>, vector<8x128xf32> -> vector<8x128xf32>
    %cst_67 = arith.constant 0.000000e+00 : f32
    %92 = vector.broadcast %cst_67 : f32 to vector<8x128xf32>
    %93 = arith.maximumf %91, %92 : vector<8x128xf32>
    %c0_68 = arith.constant 0 : index
    %c0_69 = arith.constant 0 : index
    %94 = vector.load %arg11[%c0_68, %c0_69] : memref<8x128xf32, #tpu.memory_space<vmem>>, vector<8x128xf32>
    tpu.vector_store %arg11[%c0_68, %c0_69], %93 {strides = array<i32>} : memref<8x128xf32, #tpu.memory_space<vmem>>, vector<8x128xf32>,
    return
  }
}

</mosaic_0001>

<bundles_post_ra>
// kernel: tpu_custom_call.1
= control target key start
LH: loop header
LB: loop body
LE: loop exit
PB: predicated region body
PF: predicated region fallthrough
CT: control target
= control target key end

     0   :  { %18 = vsyncpa [#allocation7], 0  ;;  %s2039_s0 = inlined_call_operand.hbm [shape: s32[8], index: 0, kind: input, shape index: {}]   ;;  %s2040_s1 = inlined_call_operand.hbm [shape: f32[16,128], index: 1, kind: input, shape index: {}]   ;;  %s2041_s2 = inlined_call_operand.hbm [shape: f32[16,16], index: 2, kind: input, shape index: {}]   ;;  %s2042_s3 = inlined_call_operand.vmem [shape: f32[8,8], index: 3, kind: input, shape index: {}]   ;;  %s2043_s4 = inlined_call_operand.hbm [shape: f32[128,128], index: 4, kind: input, shape index: {}]   ;;  %s2044_s5 = inlined_call_operand.vmem [shape: f32[1,128], index: 5, kind: input, shape index: {}]   ;;  %s2045_s6 = inlined_call_operand.hbm [shape: f32[128,128], index: 6, kind: input, shape index: {}]   ;;  %s2046_s7 = inlined_call_operand.vmem [shape: f32[1,128], index: 7, kind: input, shape index: {}]   ;;  %s2047_s8 = inlined_call_operand.hbm [shape: f32[128,128], index: 8, kind: input, shape index: {}]   ;;  %s2048_s9 = inlined_call_operand.hbm [shape: f32[128,128], index: 9, kind: input, shape index: {}]   ;;  %s2049_s10 = inlined_call_operand.hbm [shape: f32[128,128], index: 10, kind: input, shape index: {}]   ;;  %s2050_s11 = inlined_call_operand.hbm [shape: f32[8,128], index: 11, kind: output, shape index: {0}]   ;;  %s2051_s12 = inlined_call_operand.hbm [shape: f32[8,128], index: 12, kind: output, shape index: {1}]  }
   0x1   :  { %19 = vsyncpa [#allocation5], 0 }
   0x2   :  { %20 = vsyncpa [#allocation10], 0 }
   0x3   :  { %21 = vsyncpa [#allocation13], 0 }
   0x4   :  { %22 = vsyncpa [#allocation16], 0 }
   0x5   :  { %23 = vsyncpa [#allocation6], 0 }
   0x6   :  { %24 = vsyncpa [#allocation20], 0  ;;  %s1730_s21 = smov [#allocation9]   ;;  %s1731_s23 = smov [#allocation12]  }
   0x7   :  { %s50_s22 = sshll.u32 %s1730_s21, 4  ;;  %s78_s24 = sshll.u32 %s1731_s23, 4  ;;  %s51_s22 = int_to_ptr.vmem [resolvable:$true] %s50_s22  ;;  %s1810_s24 = int_to_ptr.vmem [resolvable:$true] %s78_s24 }
   0x8   :  { %s1508_s27 = scalar_lea.hbm %s2041_s2, 256 }
   0x9   :  { %p1509_p0 = scmp.ne.s32.totalorder %s2041_s2, %s1508_s27  ;;  %p1512_p1 = scmp.lt.u32.totalorder %s1508_s27, %s2041_s2 }
   0xb   :  { %p1514_p2 = pnand %p1512_p1, %p1509_p0 }
   0xd   :  { %1517 = shalt.err (!%p1514_p2)
}
   0xe   :  { %s1518_s14 = scalar_lea.vmem %s51_s22, 256  ;;  %p1523_p4 = scmp.lt.s32.totalorder %s51_s22, %s51_s22 }
   0xf   :  { %p1519_p3 = scmp.ne.s32.totalorder %s51_s22, %s1518_s14  ;;  %p1524_p5 = scmp.lt.s32.totalorder %s1518_s14, %s1518_s14 }
  0x11   :  { %p1525_p6 = por %p1524_p5, %p1523_p4 }
  0x13   :  { %p1526_p7 = pnand %p1525_p6, %p1519_p3 }
  0x15   :  { %1529 = shalt.err (!%p1526_p7)
}
  0x16   :  { %s1732_s15 = smov 128   ;;  %s1733_s16 = smov 8  }
  0x17   :  { %56 = dma.hbm_to_vmem [thread:$0]  %s2041_s2, 256, %s51_s22, [#allocation10], %s1732_s15, %s1732_s15, %s1733_s16  }
  0x18   :  { %s1530_s21 = scalar_lea.hbm %s2045_s6, 2048 }
  0x19   :  { %p1531_p8 = scmp.ne.s32.totalorder %s2045_s6, %s1530_s21  ;;  %p1534_p9 = scmp.lt.u32.totalorder %s1530_s21, %s2045_s6 }
  0x1b   :  { %p1536_p10 = pnand %p1534_p9, %p1531_p8 }
  0x1d   :  { %1539 = shalt.err (!%p1536_p10)
}
  0x1e   :  { %s1540_s28 = scalar_lea.vmem %s1810_s24, 2048  ;;  %p1545_p12 = scmp.lt.s32.totalorder %s1810_s24, %s1810_s24 }
  0x1f   :  { %p1541_p11 = scmp.ne.s32.totalorder %s1810_s24, %s1540_s28  ;;  %p1546_p13 = scmp.lt.s32.totalorder %s1540_s28, %s1540_s28 }
  0x21   :  { %p1547_p0 = por %p1546_p13, %p1545_p12 }
  0x23   :  { %p1548_p1 = pnand %p1547_p0, %p1541_p11 }
  0x25   :  { %1551 = shalt.err (!%p1548_p1)
}
  0x26   :  { %84 = dma.hbm_to_vmem [thread:$0]  %s2045_s6, 2048, %s1810_s24, [#allocation13], %s1732_s15, %s1732_s15, %s1733_s16  }
  0x27   :  { %s1734_s29 = smov [#allocation15]   ;;  %s1735_s13 = smov [#allocation8]  }
  0x28   :  { %s104_s30 = sshll.u32 %s1734_s29, 4  ;;  %s38_s14 = sshll.u32 %s1735_s13, 4  ;;  %s105_s30 = int_to_ptr.vmem [resolvable:$true] %s104_s30  ;;  %s39_s14 = int_to_ptr.vmem [resolvable:$true] %s38_s14 }
  0x29   :  { %s1552_s19 = scalar_lea.hbm %s2048_s9, 2048 }
  0x2a   :  { %p1553_p2 = scmp.ne.s32.totalorder %s2048_s9, %s1552_s19  ;;  %p1556_p3 = scmp.lt.u32.totalorder %s1552_s19, %s2048_s9 }
  0x2c   :  { %p1558_p4 = pnand %p1556_p3, %p1553_p2 }
  0x2e   :  { %1561 = shalt.err (!%p1558_p4)
}
  0x2f   :  { %s1562_s6 = scalar_lea.vmem %s105_s30, 2048  ;;  %p1567_p6 = scmp.lt.s32.totalorder %s105_s30, %s105_s30 }
  0x30   :  { %p1563_p5 = scmp.ne.s32.totalorder %s105_s30, %s1562_s6  ;;  %p1568_p7 = scmp.lt.s32.totalorder %s1562_s6, %s1562_s6 }
  0x32   :  { %p1569_p8 = por %p1568_p7, %p1567_p6 }
  0x34   :  { %p1570_p9 = pnand %p1569_p8, %p1563_p5 }
  0x36   :  { %1573 = shalt.err (!%p1570_p9)
}
  0x37   :  { %110 = dma.hbm_to_vmem [thread:$0]  %s2048_s9, 2048, %s105_s30, [#allocation16], %s1732_s15, %s1732_s15, %s1733_s16  }
  0x38   :  { %s1574_s2 = scalar_lea.hbm %s2039_s0, 16 }
  0x39   :  { %p1575_p10 = scmp.ne.s32.totalorder %s2039_s0, %s1574_s2  ;;  %p1578_p11 = scmp.lt.u32.totalorder %s1574_s2, %s2039_s0 }
  0x3b   :  { %p1580_p12 = pnand %p1578_p11, %p1575_p10 }
  0x3d   :  { %1583 = shalt.err (!%p1580_p12)
}
  0x3e   :  { %s1736_s18 = smov [#allocation4]   ;;  %s1584_s21 = scalar_lea.hbm %s2040_s1, 256 }
  0x3f   :  { %32 = dma.hbm_to_smem %s2039_s0, 16, %s1736_s18, [#allocation7]  }
  0x40   :  { %p1585_p13 = scmp.ne.s32.totalorder %s2040_s1, %s1584_s21  ;;  %p1588_p0 = scmp.lt.u32.totalorder %s1584_s21, %s2040_s1 }
  0x42   :  { %p1590_p1 = pnand %p1588_p0, %p1585_p13 }
  0x44   :  { %1593 = shalt.err (!%p1590_p1)
}
  0x45   :  { %s1594_s26 = scalar_lea.vmem %s39_s14, 256  ;;  %p1599_p3 = scmp.lt.s32.totalorder %s39_s14, %s39_s14 }
  0x46   :  { %p1595_p2 = scmp.ne.s32.totalorder %s39_s14, %s1594_s26  ;;  %p1600_p4 = scmp.lt.s32.totalorder %s1594_s26, %s1594_s26 }
  0x48   :  { %p1601_p5 = por %p1600_p4, %p1599_p3 }
  0x4a   :  { %p1602_p6 = pnand %p1601_p5, %p1595_p2 }
  0x4c   :  { %1605 = shalt.err (!%p1602_p6)
}
  0x4d   :  { %44 = dma.hbm_to_vmem [thread:$0]  %s2040_s1, 256, %s39_s14, [#allocation5], %s1732_s15, %s1732_s15, %s1733_s16  }
  0x4e   :  { %s1737_s28 = smov [#allocation11]   ;;  %s1738_s22 = smov [#allocation14]  }
  0x4f   :  { %s64_s2 = sshll.u32 %s1737_s28, 4  ;;  %s92_s29 = sshll.u32 %s1738_s22, 4  ;;  %s65_s2 = int_to_ptr.vmem [resolvable:$true] %s64_s2  ;;  %s93_s29 = int_to_ptr.vmem [resolvable:$true] %s92_s29 }
  0x50   :  { %s1606_s18 = scalar_lea.hbm %s2043_s4, 2048 }
  0x51   :  { %p1607_p7 = scmp.ne.s32.totalorder %s2043_s4, %s1606_s18  ;;  %p1610_p8 = scmp.lt.u32.totalorder %s1606_s18, %s2043_s4 }
  0x53   :  { %p1612_p9 = pnand %p1610_p8, %p1607_p7 }
  0x55   :  { %1615 = shalt.err (!%p1612_p9)
}
  0x56   :  { %s1616_s1 = scalar_lea.vmem %s65_s2, 2048  ;;  %p1621_p11 = scmp.lt.s32.totalorder %s65_s2, %s65_s2 }
  0x57   :  { %p1617_p10 = scmp.ne.s32.totalorder %s65_s2, %s1616_s1  ;;  %p1622_p12 = scmp.lt.s32.totalorder %s1616_s1, %s1616_s1 }
  0x59   :  { %p1623_p13 = por %p1622_p12, %p1621_p11 }
  0x5b   :  { %p1624_p0 = pnand %p1623_p13, %p1617_p10 }
  0x5d   :  { %1627 = shalt.err (!%p1624_p0)
}
  0x5e   :  { %70 = dma.hbm_to_vmem [thread:$0]  %s2043_s4, 2048, %s65_s2, [#allocation10], %s1732_s15, %s1732_s15, %s1733_s16  }
  0x5f   :  { %s1628_s6 = scalar_lea.hbm %s2047_s8, 2048 }
  0x60   :  { %p1629_p1 = scmp.ne.s32.totalorder %s2047_s8, %s1628_s6  ;;  %p1632_p2 = scmp.lt.u32.totalorder %s1628_s6, %s2047_s8 }
  0x62   :  { %p1634_p3 = pnand %p1632_p2, %p1629_p1 }
  0x64   :  { %1637 = shalt.err (!%p1634_p3)
}
  0x65   :  { %s1638_s28 = scalar_lea.vmem %s93_s29, 2048  ;;  %p1643_p5 = scmp.lt.s32.totalorder %s93_s29, %s93_s29 }
  0x66   :  { %p1639_p4 = scmp.ne.s32.totalorder %s93_s29, %s1638_s28  ;;  %p1644_p6 = scmp.lt.s32.totalorder %s1638_s28, %s1638_s28 }
  0x68   :  { %p1645_p7 = por %p1644_p6, %p1643_p5 }
  0x6a   :  { %p1646_p8 = pnand %p1645_p7, %p1639_p4 }
  0x6c   :  { %1649 = shalt.err (!%p1646_p8)
}
  0x6d   :  { %98 = dma.hbm_to_vmem [thread:$0]  %s2047_s8, 2048, %s93_s29, [#allocation13], %s1732_s15, %s1732_s15, %s1733_s16  }
  0x6e   :  { %s1739_s22 = smov [#allocation17]   ;;  %s1650_s19 = scalar_lea.hbm %s2049_s10, 2048 }
  0x6f   :  { %s116_s13 = sshll.u32 %s1739_s22, 4  ;;  %p1651_p9 = scmp.ne.s32.totalorder %s2049_s10, %s1650_s19  ;;  %s117_s13 = int_to_ptr.vmem [resolvable:$true] %s116_s13 }
  0x70   :  { %p1654_p10 = scmp.lt.u32.totalorder %s1650_s19, %s2049_s10 }
  0x72   :  { %p1656_p11 = pnand %p1654_p10, %p1651_p9 }
  0x74   :  { %1659 = shalt.err (!%p1656_p11)
}
  0x75   :  { %s1660_s14 = scalar_lea.vmem %s117_s13, 2048  ;;  %p1665_p13 = scmp.lt.s32.totalorder %s117_s13, %s117_s13 }
  0x76   :  { %p1661_p12 = scmp.ne.s32.totalorder %s117_s13, %s1660_s14  ;;  %p1666_p0 = scmp.lt.s32.totalorder %s1660_s14, %s1660_s14 }
  0x78   :  { %p1667_p1 = por %p1666_p0, %p1665_p13 }
  0x7a   :  { %p1668_p2 = pnand %p1667_p1, %p1661_p12 }
  0x7c   :  { %1671 = shalt.err (!%p1668_p2)
}
  0x7d   :  { %122 = dma.hbm_to_vmem [thread:$0]  %s2049_s10, 2048, %s117_s13, [#allocation16], %s1732_s15, %s1732_s15, %s1733_s16  }
  0x7e   :  { %1716 = dma.done.wait [#allocation7], 16  }
  0x7f   :  { %1717 = vsyncadd [#allocation7], 4294967280 }
  0x80   :  { %1718 = dma.done.wait [#allocation5], 256  }
  0x81   :  { %1719 = vsyncadd [#allocation5], 4294967040 }
  0x82   :  { %1720 = dma.done.wait [#allocation10], 2304  }
  0x83   :  { %1721 = vsyncadd [#allocation10], 4294964992 }
  0x84   :  { %1722 = dma.done.wait [#allocation13], 4096  }
  0x85   :  { %1723 = vsyncadd [#allocation13], 4294963200 }
  0x86   :  { %1724 = dma.done.wait [#allocation16], 4096  }
  0x87   :  { %1725 = vsyncadd [#allocation16], 4294963200 }
  0x88   :  { %147 = sfence }
  0x89   :  { %v167_v0 = vld [vmem:[#allocation11] sm:$0xff]  ;;  %v168_v1 = vld [vmem:[#allocation11 + $0x8] sm:$0xff]  ;;  %v169_v2 = vld [vmem:[#allocation11 + $0x10] sm:$0xff]  ;;  %vm156_vm0 = vcmask 130048   ;;  %vm1741_vm5 = vmmov 0   ;;  %s537_s21 = sld [smem:[#allocation4]] }
  0x8a   :  { %v1343_v3 = vpack.c.bf16 %v168_v1, %v167_v0  ;;  %v170_v4 = vld [vmem:[#allocation11 + $0x18] sm:$0xff]  ;;  %v171_v6 = vld [vmem:[#allocation11 + $0x20] sm:$0xff]  ;;  %v172_v7 = vld [vmem:[#allocation11 + $0x28] sm:$0xff]  ;;  %s1036_s23 = sld [smem:[#allocation4 + $0x1]]  ;;  %s1037_s25 = sld [smem:[#allocation4 + $0x2]]  ;;  %vm571_vm6 = vcmask 64512  }
  0x8b   :  { %v1347_v5 = vpack.c.bf16 %v170_v4, %v169_v2  ;;  %v1351_v8 = vpack.c.bf16 %v172_v7, %v171_v6  ;;  %v148_v9 = vld [vmem:[#allocation8] sm:$0xff]  ;;  %v173_v10 = vld [vmem:[#allocation11 + $0x30] sm:$0xff]  ;;  %v174_v11 = vld [vmem:[#allocation11 + $0x38] sm:$0xff]  ;;  %s1038_s6 = sld [smem:[#allocation4 + $0x3]]  ;;  %s1039_s24 = sld [smem:[#allocation4 + $0x4]] }
  0x8c   :  { %1344 = vmatprep.subr.bf16.mxu0 %v1343_v3  ;;  %vm150_vm1 = vcmp.ne.f32.partialorder %v148_v9, %v148_v9  ;;  %v1934_v12 = vld [vmem:[#allocation9] sm:$0xff]  ;;  %v1938_v14 = vld [vmem:[#allocation9 + $0x8] sm:$0xff]  ;;  %v1355_v15 = vpack.c.bf16 %v174_v11, %v173_v10  ;;  %v175_v16 = vld [vmem:[#allocation11 + $0x40] sm:$0xff]  ;;  %s1040_s26 = sld [smem:[#allocation4 + $0x5]]  ;;  %s1041_s0 = sld [smem:[#allocation4 + $0x6]] }
  0x8d   :  { %1346 = vmatpush3.bf16.msra.mxu0 %v1343_v3  ;;  %vm1026_vm2 = vmneg %vm150_vm1  ;;  %v157_v13 = vsel %vm156_vm0, %v1934_v12, 0.0  ;;  %1183 = vmatprep.mubr.msk.f32.mxu1 %vm156_vm0, %v1934_v12  ;;  %v176_v17 = vld [vmem:[#allocation11 + $0x48] sm:$0xff]  ;;  %v160_v18 = vsel %vm156_vm0, %v1938_v14, 0.0  ;;  %v177_v20 = vld [vmem:[#allocation11 + $0x50] sm:$0xff]  ;;  %s1042_s27 = sld [smem:[#allocation4 + $0x7]] }
  0x8e   :  { %1348 = vmatprep.subr.bf16.mxu0 %v1347_v5  ;;  %1176 = vmatprep.mubr.msk.f32.mxu0 %vm1026_vm2, %v148_v9  ;;  %v1359_v19 = vpack.c.bf16 %v176_v17, %v175_v16  ;;  %v178_v21 = vld [vmem:[#allocation11 + $0x58] sm:$0xff]  ;;  %v179_v23 = vld [vmem:[#allocation11 + $0x60] sm:$0xff]  ;;  %v180_v24 = vld [vmem:[#allocation11 + $0x68] sm:$0xff]  ;;  %v1740_v17 = vmov 0.0|0.0  }
  0x8f   :  { %158 = vadd.xlane.f32.xlu0 %v157_v13  ;;  %v1363_v22 = vpack.c.bf16 %v178_v21, %v177_v20  ;;  %v1367_v25 = vpack.c.bf16 %v180_v24, %v179_v23  ;;  %v181_v26 = vld [vmem:[#allocation11 + $0x70] sm:$0xff]  ;;  %v182_v27 = vld [vmem:[#allocation11 + $0x78] sm:$0xff]  ;;  %v149_v29 = vld [vmem:[#allocation8 + $0x8] sm:$0xff] }
  0x90   :  { %v1371_v28 = vpack.c.bf16 %v182_v27, %v181_v26  ;;  %vm151_vm3 = vcmp.ne.f32.partialorder %v149_v29, %v149_v29  ;;  %v354_v39 = vld [vmem:[#allocation12] sm:$0xff]  ;;  %v355_v40 = vld [vmem:[#allocation12 + $0x8] sm:$0xff]  ;;  %v356_v44 = vld [vmem:[#allocation12 + $0x10] sm:$0xff]  ;;  %s542_s28 = scalar_lea.vmem [#allocation2], %s1036_s23  ;;  %s546_s4 = scalar_lea.vmem [#allocation2], %s1037_s25 }
  0x91   :  { %1350 = vmatpush3.bf16.msra.mxu0 %v1347_v5  ;;  %vm1028_vm4 = vmneg %vm151_vm3  ;;  %v1379_v43 = vpack.c.bf16 %v355_v40, %v354_v39  ;;  %v357_v45 = vld [vmem:[#allocation12 + $0x18] sm:$0xff]  ;;  %v358_v47 = vld [vmem:[#allocation12 + $0x20] sm:$0xff]  ;;  %s550_s2 = scalar_lea.vmem [#allocation2], %s1038_s6  ;;  %s554_s22 = scalar_lea.vmem [#allocation2], %s1039_s24 }
  0x92   :  { %1352 = vmatprep.subr.bf16.mxu0 %v1351_v8  ;;  %v1383_v46 = vpack.c.bf16 %v357_v45, %v356_v44  ;;  %v359_v48 = vld [vmem:[#allocation12 + $0x28] sm:$0xff]  ;;  %v360_v50 = vld [vmem:[#allocation12 + $0x30] sm:$0xff]  ;;  %v361_v51 = vld [vmem:[#allocation12 + $0x38] sm:$0xff]  ;;  %s558_s13 = scalar_lea.vmem [#allocation2], %s1040_s26  ;;  %s562_s17 = scalar_lea.vmem [#allocation2], %s1041_s0 }
  0x93   :  { %161 = vadd.xlane.f32.xlu0 %v160_v18  ;;  %v1387_v49 = vpack.c.bf16 %v359_v48, %v358_v47  ;;  %v1391_v52 = vpack.c.bf16 %v361_v51, %v360_v50  ;;  %v362_v53 = vld [vmem:[#allocation12 + $0x40] sm:$0xff]  ;;  %v363_v54 = vld [vmem:[#allocation12 + $0x48] sm:$0xff]  ;;  %v364_v56 = vld [vmem:[#allocation12 + $0x50] sm:$0xff]  ;;  %s566_s18 = scalar_lea.vmem [#allocation2], %s1042_s27 }
  0x94   :  { %v1395_v55 = vpack.c.bf16 %v363_v54, %v362_v53  ;;  %v365_v57 = vld [vmem:[#allocation12 + $0x58] sm:$0xff]  ;;  %v366_v59 = vld [vmem:[#allocation12 + $0x60] sm:$0xff]  ;;  %v367_v60 = vld [vmem:[#allocation12 + $0x68] sm:$0xff] }
  0x95   :  { %1354 = vmatpush3.bf16.msra.mxu0 %v1351_v8  ;;  %v1399_v58 = vpack.c.bf16 %v365_v57, %v364_v56  ;;  %v1403_v61 = vpack.c.bf16 %v367_v60, %v366_v59  ;;  %v368_v62 = vld [vmem:[#allocation12 + $0x70] sm:$0xff]  ;;  %v369_v63 = vld [vmem:[#allocation12 + $0x78] sm:$0xff]  ;;  %v1032_v4 = vld [vmem:[%s2044_s5] ss:$0 sm:$0xff] }
  0x96   :  { %1356 = vmatprep.subr.bf16.mxu0 %v1355_v15  ;;  %v1407_v0 = vpack.c.bf16 %v369_v63, %v368_v62  ;;  %v579_v13 = vld [vmem:[#allocation14] sm:$0xff]  ;;  %v581_v16 = vld [vmem:[#allocation14 + $0x10] sm:$0xff]  ;;  %v584_v26 = vld [vmem:[#allocation14 + $0x28] sm:$0xff] }
  0x97   :  { %v591_v39 = vld [vmem:[#allocation14 + $0x60] sm:$0xff]  ;;  %v592_v40 = vld [vmem:[#allocation14 + $0x68] sm:$0xff] }
  0x98   :  { %v1035_v48 = vld [vmem:[%s2046_s7] ss:$0 sm:$0xff]  ;;  %s538_s7 = scalar_lea.vmem [#allocation2], %s537_s21 }
  0x99   :  { %1358 = vmatpush3.bf16.msra.mxu0 %v1355_v15  ;;  %v580_v15 = vld [vmem:[#allocation14 + $0x8] sm:$0xff]  ;;  %v1987_v63 = vld [vmem:[%s2042_s3] sm:$0xff]  ;;  %s1743_s3 = smov [#allocation19]  }
  0x9a   :  { %1360 = vmatprep.subr.bf16.mxu0 %v1359_v19  ;;  %v1416_v18 = vpack.c.bf16 %v580_v15, %v579_v13  ;;  %v745_v13 = vld [vmem:[#allocation15 + $0x30] sm:$0xff]  ;;  %v746_v15 = vld [vmem:[#allocation15 + $0x38] sm:$0xff]  ;;  %s1001_s9 = sshll.u32 %s1743_s3, 4  ;;  %s1002_s9 = int_to_ptr.vmem [resolvable:$true] %s1001_s9 }
  0x9b   :  { %s1672_s30 = scalar_lea.vmem %s1002_s9, 128  ;;  %p1677_p4 = scmp.lt.s32.totalorder %s1002_s9, %s1002_s9 }
  0x9c   :  { %p1673_p3 = scmp.ne.s32.totalorder %s1002_s9, %s1672_s30  ;;  %p1678_p5 = scmp.lt.s32.totalorder %s1672_s30, %s1672_s30 }
  0x9d   :  { %1362 = vmatpush3.bf16.msra.mxu0 %v1359_v19  ;;  %v582_v19 = vld [vmem:[#allocation14 + $0x18] sm:$0xff] }
  0x9e   :  { %1364 = vmatprep.subr.bf16.mxu0 %v1363_v22  ;;  %v1419_v20 = vpack.c.bf16 %v582_v19, %v581_v16  ;;  %v1449_v16 = vpack.c.bf16 %v746_v15, %v745_v13  ;;  %v748_v19 = vld [vmem:[#allocation15 + $0x48] sm:$0xff]  ;;  %p1679_p6 = por %p1678_p5, %p1677_p4 }
  0xa0   :  { %p1680_p7 = pnand %p1679_p6, %p1673_p3 }
  0xa1   :  { %1366 = vmatpush3.bf16.msra.mxu0 %v1363_v22 }
  0xa2   :  { %1368 = vmatprep.subr.bf16.mxu0 %v1367_v25 }
  0xa5   :  { %1370 = vmatpush3.bf16.msra.mxu0 %v1367_v25  ;;  %v583_v25 = vld [vmem:[#allocation14 + $0x20] sm:$0xff] }
  0xa6   :  { %1372 = vmatprep.subr.bf16.mxu0 %v1371_v28  ;;  %v1422_v27 = vpack.c.bf16 %v584_v26, %v583_v25  ;;  %v753_v26 = vld [vmem:[#allocation15 + $0x70] sm:$0xff] }
  0xa9   :  { %1374 = vmatpush3.bf16.msra.mxu0 %v1371_v28  ;;  %v585_v28 = vld [vmem:[#allocation14 + $0x30] sm:$0xff] }
  0xaa   :  { %1415 = vmatprep.subr.bf16.mxu0 %v1740_v17 }
  0xac   :  { %1177 = vmatmul.mubr.msk.f32.vlgmr.msra.gmra.mrb[0].mxu0 %vm1028_vm4, %v149_v29  ;;  %v586_v29 = vld [vmem:[#allocation14 + $0x38] sm:$0xff] }
  0xad   :  { %1417 = vmatpush3.bf16.msra.mxu0 %v1416_v18  ;;  %v747_v18 = vld [vmem:[#allocation15 + $0x40] sm:$0xff] }
  0xae   :  { %1418 = vmatprep.subr.bf16.mxu0 %v1740_v17 }
  0xb1   :  { %1420 = vmatpush3.bf16.msra.mxu0 %v1419_v20  ;;  %v1452_v20 = vpack.c.bf16 %v748_v19, %v747_v18 }
  0xb2   :  { %1421 = vmatprep.subr.bf16.mxu0 %v1740_v17 }
  0xb5   :  { %1423 = vmatpush3.bf16.msra.mxu0 %v1422_v27  ;;  %v754_v27 = vld [vmem:[#allocation15 + $0x78] sm:$0xff] }
  0xb6   :  { %1424 = vmatprep.subr.bf16.mxu0 %v1740_v17 }
 0x11c   :  { %v159_v30 = vpop.xlane.xlu0 %158 }
 0x11d   :  { %v163_v33 = vadd.f32 1.0, %v159_v30  ;;  %v1425_v30 = vpack.c.bf16 %v586_v29, %v585_v28  ;;  %v1461_v28 = vpack.c.bf16 %v754_v27, %v753_v26 }
 0x11f   :  { %1426 = vmatpush3.bf16.msra.mxu0 %v1425_v30 }
 0x120   :  { %v162_v31 = vpop.xlane.xlu0 %161  ;;  %1427 = vmatprep.subr.bf16.mxu0 %v1740_v17 }
 0x121   :  { %v164_v32 = vadd.f32 1.0, %v162_v31  ;;  %v587_v31 = vld [vmem:[#allocation14 + $0x40] sm:$0xff] }
 0x123   :  { %1502 = vrsqrt.f32 %v164_v32  ;;  %v588_v32 = vld [vmem:[#allocation14 + $0x48] sm:$0xff] }
 0x124   :  { %1504 = vrsqrt.f32 %v163_v33  ;;  %v1428_v33 = vpack.c.bf16 %v588_v32, %v587_v31 }
 0x126   :  { %1429 = vmatpush3.bf16.msra.mxu0 %v1428_v33 }
 0x127   :  { %1430 = vmatprep.subr.bf16.mxu0 %v1740_v17 }
 0x12d   :  { %v1944_v34 = vpop.eup %1502 }
 0x12e   :  { %v1946_v36 = vpop.eup %1504 }
 0x17f   :  { %v1178_v35 = vpop.f32.mrb[0].mxu0 }
 0x180   :  { %v259_v37 = vmul.f32 %v1944_v34, %v1178_v35  ;;  %v249_v38 = vpop.f32.mrb[1].mxu0  ;;  %v589_v35 = vld [vmem:[#allocation14 + $0x50] sm:$0xff] }
 0x181   :  { %v258_v41 = vmul.f32 %v1946_v36, %v249_v38 }
 0x183   :  { %v1375_v42 = vpack.c.bf16 %v259_v37, %v258_v41 }
 0x185   :  { %1376 = vmatprep.subr.bf16.mxu1 %v1375_v42 }
 0x186   :  { %1378 = vmatpush3.bf16.msra.mxu1 %v1375_v42  ;;  %v593_v42 = vld [vmem:[#allocation14 + $0x70] sm:$0xff] }
 0x187   :  { %1380 = vmatprep.subr.bf16.mxu1 %v1379_v43 }
 0x189   :  { %1184 = vmatmul.mubr.msk.f32.vlgmr.msra.gmra.mrb[0].mxu1 %vm156_vm0, %v1938_v14 }
 0x18a   :  { %1382 = vmatpush3.bf16.msra.mxu1 %v1379_v43  ;;  %v594_v43 = vld [vmem:[#allocation14 + $0x78] sm:$0xff] }
 0x18b   :  { %1384 = vmatprep.subr.bf16.mxu1 %v1383_v46  ;;  %v1437_v44 = vpack.c.bf16 %v594_v43, %v593_v42  ;;  %v901_v43 = vld [vmem:[#allocation17 + $0x20] sm:$0xff] }
 0x18e   :  { %1386 = vmatpush3.bf16.msra.mxu1 %v1383_v46 }
 0x18f   :  { %1388 = vmatprep.subr.bf16.mxu1 %v1387_v49 }
 0x192   :  { %1390 = vmatpush3.bf16.msra.mxu1 %v1387_v49 }
 0x193   :  { %1392 = vmatprep.subr.bf16.mxu1 %v1391_v52 }
 0x196   :  { %1394 = vmatpush3.bf16.msra.mxu1 %v1391_v52 }
 0x197   :  { %1396 = vmatprep.subr.bf16.mxu1 %v1395_v55 }
 0x19a   :  { %1398 = vmatpush3.bf16.msra.mxu1 %v1395_v55 }
 0x19b   :  { %1400 = vmatprep.subr.bf16.mxu1 %v1399_v58 }
 0x19e   :  { %1402 = vmatpush3.bf16.msra.mxu1 %v1399_v58 }
 0x19f   :  { %1404 = vmatprep.subr.bf16.mxu1 %v1403_v61 }
 0x1a2   :  { %1406 = vmatpush3.bf16.msra.mxu1 %v1403_v61 }
 0x1a3   :  { %1408 = vmatprep.subr.bf16.mxu1 %v1407_v0 }
 0x1a6   :  { %1410 = vmatpush3.bf16.msra.mxu1 %v1407_v0  ;;  %v572_v0 = vsel %vm571_vm6, %v1987_v63, 0.0 }
 0x1a7   :  { %573 = vadd.xlane.f32.xlu1 %v572_v0 }
 0x234   :  { %v574_v29 = vpop.xlane.xlu1 %573 }
 0x235   :  { %vm575_vm7 = vcmp.eq.f32.partialorder %v574_v29, 0.0 }
 0x236   :  { %v576_v30 = vsel %vm575_vm7, 1.0, %v574_v29 }
 0x237   :  { %1506 = vrcp.f32 %v576_v30 }
 0x241   :  { %v1507_v31 = vpop.eup %1506 }
 0x25c   :  { %v1185_v1 = vpop.f32.mrb[0].mxu1 }
 0x25d   :  { %v338_v2 = vadd.f32 %v1185_v1, %v259_v37  ;;  %v332_v3 = vpop.f32.mrb[1].mxu1  ;;  %v590_v37 = vld [vmem:[#allocation14 + $0x58] sm:$0xff]  ;;  %v739_v1 = vld [vmem:[#allocation15] sm:$0xff] }
 0x25e   :  { %v333_v5 = vadd.f32 %v332_v3, %v258_v41  ;;  %v1431_v38 = vpack.c.bf16 %v590_v37, %v589_v35  ;;  %v1434_v41 = vpack.c.bf16 %v592_v40, %v591_v39  ;;  %v897_v37 = vld [vmem:[#allocation17] sm:$0xff]  ;;  %v899_v39 = vld [vmem:[#allocation17 + $0x10] sm:$0xff] }
 0x25f   :  { %v342_v6 = vmul.f32 %v1944_v34, %v338_v2  ;;  %v740_v2 = vld [vmem:[#allocation15 + $0x8] sm:$0xff] }
 0x260   :  { %v341_v7 = vmul.f32 %v1946_v36, %v333_v5  ;;  %1432 = vmatpush3.bf16.msra.mxu0 %v1431_v38  ;;  %v1440_v3 = vpack.c.bf16 %v740_v2, %v739_v1  ;;  %v741_v5 = vld [vmem:[#allocation15 + $0x10] sm:$0xff]  ;;  %v898_v38 = vld [vmem:[#allocation17 + $0x8] sm:$0xff] }
 0x261   :  { %v351_v8 = vadd.f32 %v1032_v4, %v342_v6  ;;  %1433 = vmatprep.subr.bf16.mxu0 %v1740_v17  ;;  %v742_v6 = vld [vmem:[#allocation15 + $0x18] sm:$0xff]  ;;  %v1464_v40 = vpack.c.bf16 %v898_v38, %v897_v37 }
 0x262   :  { %v350_v9 = vadd.f32 %v1032_v4, %v341_v7 }
 0x263   :  { %v353_v11 = vmax.f32 %v351_v8, 0.0  ;;  %v1443_v8 = vpack.c.bf16 %v742_v6, %v741_v5 }
 0x264   :  { %v352_v10 = vmax.f32 %v350_v9, 0.0  ;;  %1435 = vmatpush3.bf16.msra.mxu0 %v1434_v41  ;;  %v743_v9 = vld [vmem:[#allocation15 + $0x20] sm:$0xff]  ;;  %v900_v41 = vld [vmem:[#allocation17 + $0x18] sm:$0xff] }
 0x265   :  { %1436 = vmatprep.subr.bf16.mxu0 %v1740_v17  ;;  %v1467_v42 = vpack.c.bf16 %v900_v41, %v899_v39 }
 0x266   :  { %1218 = vmatprep.mubr.f32.mxu1 %v352_v10  ;;  %v744_v10 = vld [vmem:[#allocation15 + $0x28] sm:$0xff] }
 0x267   :  { %1219 = vmatmul.mubr.f32.vlgmr.msra.gmra.mrb[2].mxu1 %v353_v11  ;;  %v1446_v11 = vpack.c.bf16 %v744_v10, %v743_v9 }
 0x268   :  { %1225 = vmatprep.mubr.msk.f32.mxu1 %vm156_vm0, %v1934_v12  ;;  %1438 = vmatpush3.bf16.msra.mxu0 %v1437_v44  ;;  %v902_v44 = vld [vmem:[#allocation17 + $0x28] sm:$0xff] }
 0x269   :  { %1463 = vmatprep.subr.bf16.mxu0 %v1740_v17 }
 0x33a   :  { %v1220_v21 = vpop.f32.mrb[2].mxu1 }
 0x33b   :  { %v446_v22 = vmul.f32 %v1944_v34, %v1220_v21  ;;  %v436_v23 = vpop.f32.mrb[3].mxu1  ;;  %v749_v21 = vld [vmem:[#allocation15 + $0x50] sm:$0xff] }
 0x33c   :  { %v445_v12 = vmul.f32 %v1946_v36, %v436_v23 }
 0x33e   :  { %v1411_v24 = vpack.c.bf16 %v446_v22, %v445_v12 }
 0x340   :  { %1412 = vmatprep.subr.bf16.mxu1 %v1411_v24 }
 0x341   :  { %1414 = vmatpush3.bf16.msra.mxu1 %v1411_v24  ;;  %v752_v24 = vld [vmem:[#allocation15 + $0x68] sm:$0xff] }
 0x344   :  { %1226 = vmatmul.mubr.msk.f32.vlgmr.msra.gmra.mrb[4].mxu1 %vm156_vm0, %v1938_v14  ;;  %v1742_v14 = vmov 0.0  }
 0x345   :  { %1260 = vmatprep.mubr.msk.f32.mxu0 %vm1741_vm5, %v1742_v14  ;;  %1263 = vmatprep.subr.mxu1 %v1742_v14 }
 0x346   :  { %1265 = vmatprep.mubr.msk.f32.mxu1 %vm1741_vm5, %v1742_v14 }
 0x417   :  { %v1227_v45 = vpop.f32.mrb[4].mxu1 }
 0x418   :  { %v519_v46 = vadd.f32 %v1227_v45, %v446_v22  ;;  %v513_v47 = vpop.f32.mrb[5].mxu1  ;;  %v750_v22 = vld [vmem:[#allocation15 + $0x58] sm:$0xff]  ;;  %v1470_v45 = vpack.c.bf16 %v902_v44, %v901_v43 }
 0x419   :  { %v514_v49 = vadd.f32 %v513_v47, %v445_v12  ;;  %v1455_v23 = vpack.c.bf16 %v750_v22, %v749_v21  ;;  %v751_v12 = vld [vmem:[#allocation15 + $0x60] sm:$0xff]  ;;  %v904_v47 = vld [vmem:[#allocation17 + $0x38] sm:$0xff] }
 0x41a   :  { %v523_v50 = vmul.f32 %v1944_v34, %v519_v46  ;;  %v1458_v25 = vpack.c.bf16 %v752_v24, %v751_v12  ;;  %v903_v46 = vld [vmem:[#allocation17 + $0x30] sm:$0xff] }
 0x41b   :  { %v522_v51 = vmul.f32 %v1946_v36, %v514_v49  ;;  %v906_v49 = vld [vmem:[#allocation17 + $0x48] sm:$0xff] }
 0x41c   :  { %v532_v52 = vadd.f32 %v1035_v48, %v523_v50 }
 0x41d   :  { %v531_v53 = vadd.f32 %v1035_v48, %v522_v51  ;;  %v1473_v48 = vpack.c.bf16 %v904_v47, %v903_v46  ;;  %v907_v51 = vld [vmem:[#allocation17 + $0x50] sm:$0xff] }
 0x41e   :  { %v534_v54 = vmax.f32 %v532_v52, 0.0  ;;  %v908_v52 = vld [vmem:[#allocation17 + $0x58] sm:$0xff] }
 0x41f   :  { %v533_v55 = vmax.f32 %v531_v53, 0.0  ;;  %v1479_v53 = vpack.c.bf16 %v908_v52, %v907_v51 }
 0x420   :  { %536 = vst [vmem:[#allocation2 + $0x8] sm:$0xff] %v534_v54  ;;  %v909_v54 = vld [vmem:[#allocation17 + $0x60] sm:$0xff] }
 0x421   :  { %535 = vst [vmem:[#allocation2] sm:$0xff] %v533_v55  ;;  %v910_v55 = vld [vmem:[#allocation17 + $0x68] sm:$0xff] }
 0x428   :  { %v539_v56 = vld [vmem:[%s538_s7] sm:$0x1] }
 0x429   :  { %v543_v34 = vld [vmem:[%s542_s28] sm:$0x1]  ;;  %540 = vst [vmem:[#allocation3] sm:$0x1] %v539_v56  ;;  %v1482_v56 = vpack.c.bf16 %v910_v55, %v909_v54 }
 0x42a   :  { %v547_v36 = vld [vmem:[%s546_s4] sm:$0x1]  ;;  %544 = vst [vmem:[#allocation3 + $0x1] sm:$0x1] %v543_v34 }
 0x42b   :  { %548 = vst [vmem:[#allocation3 + $0x2] sm:$0x1] %v547_v36  ;;  %v551_v57 = vld [vmem:[%s550_s2] sm:$0x1] }
 0x42c   :  { %v555_v58 = vld [vmem:[%s554_s22] sm:$0x1]  ;;  %552 = vst [vmem:[#allocation3 + $0x3] sm:$0x1] %v551_v57  ;;  %v911_v57 = vld [vmem:[#allocation17 + $0x70] sm:$0xff] }
 0x42d   :  { %v559_v59 = vld [vmem:[%s558_s13] sm:$0x1]  ;;  %556 = vst [vmem:[#allocation3 + $0x4] sm:$0x1] %v555_v58  ;;  %v912_v58 = vld [vmem:[#allocation17 + $0x78] sm:$0xff] }
 0x42e   :  { %560 = vst [vmem:[#allocation3 + $0x5] sm:$0x1] %v559_v59  ;;  %v563_v60 = vld [vmem:[%s562_s17] sm:$0x1]  ;;  %v1485_v59 = vpack.c.bf16 %v912_v58, %v911_v57 }
 0x42f   :  { %v567_v61 = vld [vmem:[%s566_s18] sm:$0x1]  ;;  %564 = vst [vmem:[#allocation3 + $0x6] sm:$0x1] %v563_v60 }
 0x430   :  { %568 = vst [vmem:[#allocation3 + $0x7] sm:$0x1] %v567_v61 }
 0x437   :  { %v569_v62 = vld [vmem:[#allocation3] sm:$0xff] }
 0x438   :  { %1261 = vmatmul.mubr.f32.vlgmr.msra.gmra.mrb[2].mxu0 %v569_v62 }
 0x439   :  { %1340 = vmatprep.mubr.msk.f32.mxu0 %vm1741_vm5, %v1742_v14  ;;  %1465 = vmatpush3.bf16.msra.mxu0 %v1464_v40 }
 0x43a   :  { %1466 = vmatprep.subr.bf16.mxu0 %v1740_v17 }
 0x43d   :  { %1468 = vmatpush3.bf16.msra.mxu0 %v1467_v42 }
 0x43e   :  { %1469 = vmatprep.subr.bf16.mxu0 %v1740_v17 }
 0x441   :  { %1471 = vmatpush3.bf16.msra.mxu0 %v1470_v45 }
 0x442   :  { %1472 = vmatprep.subr.bf16.mxu0 %v1740_v17 }
 0x445   :  { %1474 = vmatpush3.bf16.msra.mxu0 %v1473_v48 }
 0x446   :  { %1475 = vmatprep.subr.bf16.mxu0 %v1740_v17 }
 0x50b   :  { %v661_v4 = vpop.f32.mrb[2].mxu0 }
 0x50c   :  { %v1262_v7 = vpop.f32.mrb[3].mxu0  ;;  %1264 = vmatpush3.msra.mxu1 %v661_v4 }
 0x50d   :  { %1266 = vmatmul.mubr.msk.f32.vlgmr.msra.gmra.mrb[6].mxu1 %vm571_vm6, %v1987_v63  ;;  %1439 = vmatprep.subr.bf16.mxu1 %v1740_v17 }
 0x50e   :  { %1441 = vmatpush3.bf16.msra.mxu1 %v1440_v3  ;;  %1300 = vmatprep.mubr.msk.f32.mxu1 %vm1741_vm5, %v1742_v14 }
 0x50f   :  { %1442 = vmatprep.subr.bf16.mxu1 %v1740_v17 }
 0x512   :  { %1444 = vmatpush3.bf16.msra.mxu1 %v1443_v8 }
 0x513   :  { %1445 = vmatprep.subr.bf16.mxu1 %v1740_v17 }
 0x516   :  { %1447 = vmatpush3.bf16.msra.mxu1 %v1446_v11 }
 0x517   :  { %1448 = vmatprep.subr.bf16.mxu1 %v1740_v17 }
 0x51a   :  { %1450 = vmatpush3.bf16.msra.mxu1 %v1449_v16 }
 0x51b   :  { %1451 = vmatprep.subr.bf16.mxu1 %v1740_v17 }
 0x51e   :  { %1453 = vmatpush3.bf16.msra.mxu1 %v1452_v20 }
 0x51f   :  { %1454 = vmatprep.subr.bf16.mxu1 %v1740_v17 }
 0x522   :  { %1456 = vmatpush3.bf16.msra.mxu1 %v1455_v23 }
 0x523   :  { %1457 = vmatprep.subr.bf16.mxu1 %v1740_v17 }
 0x526   :  { %1459 = vmatpush3.bf16.msra.mxu1 %v1458_v25 }
 0x527   :  { %1460 = vmatprep.subr.bf16.mxu1 %v1740_v17 }
 0x52a   :  { %1462 = vmatpush3.bf16.msra.mxu1 %v1461_v28 }
 0x52b   :  { %1303 = vmatprep.subr.mxu1 %v1742_v14 }
 0x5e0   :  { %v734_v32 = vpop.f32.mrb[6].mxu1 }
 0x5e1   :  { %v738_v33 = vmul.f32 %v1507_v31, %v734_v32  ;;  %v1267_v35 = vpop.f32.mrb[7].mxu1 }
 0x5e3   :  { %1301 = vmatmul.mubr.f32.vlgmr.msra.gmra.mrb[8].mxu1 %v738_v33 }
 0x5e4   :  { %1305 = vmatprep.mubr.msk.f32.mxu1 %vm1741_vm5, %v1742_v14  ;;  %v905_v14 = vld [vmem:[#allocation17 + $0x40] sm:$0xff] }
 0x5e5   :  { %v1476_v50 = vpack.c.bf16 %v906_v49, %v905_v14 }
 0x5e7   :  { %1477 = vmatpush3.bf16.msra.mxu0 %v1476_v50 }
 0x5e8   :  { %1478 = vmatprep.subr.bf16.mxu0 %v1740_v17 }
 0x5eb   :  { %1480 = vmatpush3.bf16.msra.mxu0 %v1479_v53 }
 0x5ec   :  { %1481 = vmatprep.subr.bf16.mxu0 %v1740_v17 }
 0x5ef   :  { %1483 = vmatpush3.bf16.msra.mxu0 %v1482_v56 }
 0x5f0   :  { %1484 = vmatprep.subr.bf16.mxu0 %v1740_v17 }
 0x5f3   :  { %1486 = vmatpush3.bf16.msra.mxu0 %v1485_v59 }
 0x6b6   :  { %v821_v34 = vpop.f32.mrb[8].mxu1 }
 0x6b7   :  { %825 = vst [vmem:[#allocation19] sm:$0xff] %v821_v34  ;;  %v1302_v36 = vpop.f32.mrb[9].mxu1  ;;  %1304 = vmatpush3.msra.mxu1 %v821_v34 }
 0x6b8   :  { %1306 = vmatmul.mubr.msk.f32.vlgmr.msra.gmra.mrb[10].mxu1 %vm571_vm6, %v1987_v63 }
 0x78b   :  { %v892_v60 = vpop.f32.mrb[10].mxu1 }
 0x78c   :  { %v896_v61 = vmul.f32 %v1507_v31, %v892_v60  ;;  %v1307_v62 = vpop.f32.mrb[11].mxu1 }
 0x78e   :  { %1341 = vmatmul.mubr.f32.vlgmr.msra.gmra.mrb[4].mxu0 %v896_v61 }
 0x78f   :  { %1683 = shalt.err (!%p1680_p7)
}
 0x790   :  { %s1684_s8 = scalar_lea.hbm %s2051_s12, 128 }
 0x791   :  { %p1685_p8 = scmp.ne.s32.totalorder %s2051_s12, %s1684_s8  ;;  %p1688_p9 = scmp.lt.u32.totalorder %s1684_s8, %s2051_s12 }
 0x793   :  { %p1690_p10 = pnand %p1688_p9, %p1685_p8 }
 0x795   :  { %1693 = shalt.err (!%p1690_p10)
}
 0x796   :  { %1004 = dma.vmem_to_hbm [thread:$0]  %s1002_s9, 128, %s2051_s12, [#allocation20]  }
 0x797   :  { %s1744_s23 = smov [#allocation18]  }
 0x798   :  { %s991_s25 = sshll.u32 %s1744_s23, 4  ;;  %s992_s25 = int_to_ptr.vmem [resolvable:$true] %s991_s25 }
 0x799   :  { %s1694_s6 = scalar_lea.vmem %s992_s25, 128  ;;  %p1699_p12 = scmp.lt.s32.totalorder %s992_s25, %s992_s25 }
 0x79a   :  { %p1695_p11 = scmp.ne.s32.totalorder %s992_s25, %s1694_s6  ;;  %p1700_p13 = scmp.lt.s32.totalorder %s1694_s6, %s1694_s6 }
 0x79c   :  { %p1701_p0 = por %p1700_p13, %p1699_p12 }
 0x79e   :  { %p1702_p1 = pnand %p1701_p0, %p1695_p11 }
 0x861   :  { %v979_v17 = vpop.f32.mrb[4].mxu0 }
 0x862   :  { %v983_v63 = vmax.f32 %v979_v17, 0.0  ;;  %v1342_v0 = vpop.f32.mrb[5].mxu0 }
 0x864   :  { %984 = vst [vmem:[#allocation18] sm:$0xff] %v983_v63 }
 0x865   :  { %1705 = shalt.err (!%p1702_p1)
}
 0x866   :  { %s1706_s0 = scalar_lea.hbm %s2050_s11, 128 }
 0x867   :  { %p1707_p2 = scmp.ne.s32.totalorder %s2050_s11, %s1706_s0  ;;  %p1710_p3 = scmp.lt.u32.totalorder %s1706_s0, %s2050_s11 }
 0x869   :  { %p1712_p4 = pnand %p1710_p3, %p1707_p2 }
 0x86b   :  { %1715 = shalt.err (!%p1712_p4)
}
 0x86c   :  { %994 = dma.vmem_to_hbm [thread:$0]  %s992_s25, 128, %s2050_s11, [#allocation6]  }
 0x86d   :  { %1726 = dma.done.wait [#allocation6], 128  }
 0x86e   :  { %1727 = vsyncadd [#allocation6], 4294967168 }
 0x86f   :  { %1728 = dma.done.wait [#allocation20], 128  }
 0x870   :  { %1729 = vsyncadd [#allocation20], 4294967168 }
 0x871   :  { %1011 = vsyncpa [#allocation5], 1 }
 0x872   :  { %1012 = vsyncpa [#allocation10], 1 }
 0x873   :  { %1013 = vsyncpa [#allocation13], 1 }
 0x874   :  { %1014 = vsyncpa [#allocation16], 1 }
 0x875   :  { %1015 = vsyncpa [#allocation6], 1 }
 0x876   :  { %1016 = vsyncpa [#allocation20], 1 }
 0x877   :  { %1017 = vsyncpa [#allocation7], 1 }

</bundles_post_ra>
